<compile_context>
chip_gen: v6e
topology: v6e:2x2x1
jax: 0.10.0
libtpu: 0.0.40
codegen_flags: <defaults>
</compile_context>

<pallas_src>
import jax
import jax.numpy as jnp
from jax.experimental import pallas as pl
from jax.experimental.pallas import tpu as pltpu


_LANES = 128
_SUBLANES = 8


def _round_up(x: int, m: int) -> int:
    return ((x + m - 1) // m) * m


def _cdiv(a: int, b: int) -> int:
    return -(-a // b)


def _embedding_kernel(idx_ref, table_ref, out_ref):
    """One grid step: gather rows*pack embedding rows via a one-hot MXU matmul.

    idx_ref   : (rows, pack)       int32  -- `pack` consecutive token ids per row
    table_ref : (pack*W, pack*D)   f32    -- block-diagonal replicated table
    out_ref   : (rows, pack*D)     f32    -- lane-dense packed embeddings
    """
    idx = idx_ref[...]                                    # (rows, pack)
    rows, pack = idx.shape
    ww = table_ref.shape[0]
    w = ww // pack

    # One-hot over the packed window axis: onehot[r, j*W + w] = (idx[r, j] == w).
    col = jax.lax.broadcasted_iota(jnp.int32, (rows, ww), 1)
    onehot = jnp.zeros((rows, ww), dtype=table_ref.dtype)
    for j in range(pack):                                  # pack is small & static
        onehot = onehot + (col == idx[:, j:j + 1] + j * w).astype(table_ref.dtype)

    # (rows, pack*W) @ block_diag(table)*pack -> (rows, pack*D), lane dense.
    # HIGHEST precision keeps the f32 gather exact (no bf16 truncation passes).
    out_ref[...] = jnp.dot(
        onehot,
        table_ref[...],
        precision=jax.lax.Precision.HIGHEST,
        preferred_element_type=jnp.float32,
    ).astype(out_ref.dtype)


def temporal_embedding(x, table, *, tile_n: int = 8192, force_kernel: bool = False):
    """Pallas equivalent of TemporalEmbedding.forward.

    x     : (B, S) integer indices in [0, window_size)
    table : (window_size, D) embedding weights
    returns (B, S, D) with table.dtype
    """
    b, s = x.shape
    w, d = table.shape
    n = b * s
    itemsize = jnp.dtype(table.dtype).itemsize

    # At tiny sizes the fixed pallas_call overhead dwarfs the work; let XLA's
    # fused gather handle it.
    if not force_kernel and n * d * itemsize < (128 << 10):
        return jnp.take(table, x, axis=0)

    # ---- lane-dense packing factor: pack consecutive tokens per 128-lane row.
    if d <= _LANES and _LANES % d == 0:
        pack = min(_LANES // d, 8)
        while pack > 1 and n % pack:
            pack //= 2
    else:
        pack = 1
    n_rows = n // pack
    dd = pack * d            # packed output row width (== 128 when pack = 128//d)
    ww = pack * w            # packed one-hot / table leading dim

    # ---- rows per grid step (tile_n is counted in tokens).
    row_tile = max(_SUBLANES, _round_up(max(tile_n, pack * _SUBLANES),
                                        pack * _SUBLANES) // pack)
    # Cap so double-buffered idx+out tiles stay well inside v7x's 64 MiB VMEM
    # (idx lanes pad to 128, out rows pad to a lane multiple).
    per_row_bytes = 2 * (_round_up(dd, _LANES) * itemsize + _LANES * 4)
    max_rows = max(_SUBLANES, ((40 << 20) // per_row_bytes) // _SUBLANES * _SUBLANES)
    row_tile = min(row_tile, max_rows)

    if row_tile >= n_rows:
        row_tile = n_rows                      # single full-array block
    else:
        # Keep >= 4 grid steps so both v7x TensorCores see work on the
        # "parallel" token axis (neutral on single-TC v5e/v6e).
        if _cdiv(n_rows, row_tile) < 4:
            row_tile = max(_SUBLANES, _round_up(_cdiv(n_rows, 4), _SUBLANES))
    grid = (_cdiv(n_rows, row_tile),)

    # Packed indices: (n_rows, pack). No explicit padding / output slicing —
    # a ragged last block is masked by Pallas.
    idx = x.reshape(n_rows, pack).astype(jnp.int32)
    # Block-diagonal table so each of the `pack` token slots selects its own
    # copy: kron(I_pack, table) has shape (pack*W, pack*D).
    table_blk = table if pack == 1 else jnp.kron(jnp.eye(pack, dtype=table.dtype), table)

    # VMEM budget: resident (double-buffer-reserved) table + 2x (idx + out)
    # tiles + compiler slack.  Explicit limit matters most on v5e (16 MiB
    # default scoped VMEM); clamp keeps v7x (64 MiB physical) safe.
    table_vmem = _round_up(ww, _SUBLANES) * _round_up(dd, _LANES) * itemsize
    out_tile_vmem = _round_up(row_tile, _SUBLANES) * _round_up(dd, _LANES) * itemsize
    idx_tile_vmem = _round_up(row_tile, _SUBLANES) * _LANES * 4
    vmem_limit = int(min(
        60 << 20,
        2 * table_vmem + 2 * (out_tile_vmem + idx_tile_vmem) + (4 << 20),
    ))

    out = pl.pallas_call(
        _embedding_kernel,
        out_shape=jax.ShapeDtypeStruct((n_rows, dd), table.dtype),
        grid=grid,
        in_specs=[
            # Per-tile packed indices, streamed through VMEM.
            pl.BlockSpec((row_tile, pack), lambda i: (i, 0)),
            # Full (block-diagonal) table, constant block index -> VMEM resident.
            pl.BlockSpec((ww, dd), lambda i: (0, 0)),
        ],
        out_specs=pl.BlockSpec((row_tile, dd), lambda i: (i, 0)),
        compiler_params=pltpu.CompilerParams(
            dimension_semantics=("parallel",),
            vmem_limit_bytes=vmem_limit,
        ),
    )(idx, table_blk)

    # (n_rows, pack*D) row-major is byte-identical to (N, D) row-major, so this
    # reshape is a free metadata change (no copy).
    return out.reshape(b, s, d)


if __name__ == "__main__":
    key = jax.random.PRNGKey(0)
    k_table, k_idx, k_table2, k_idx2 = jax.random.split(key, 4)

    # --- small shapes consistent with the module: window_size=16, dim=32,
    #     indices of shape (batch=2, seq=8).
    window_size, embedding_dim = 16, 32
    batch, seq = 2, 8
    table = jax.random.normal(k_table, (window_size, embedding_dim), dtype=jnp.float32)
    x = jax.random.randint(k_idx, (batch, seq), 0, window_size, dtype=jnp.int32)
    ref = jnp.take(table, x, axis=0)

    # Exercise the Pallas kernel path explicitly (default dispatch would route
    # these toy shapes to the jnp.take fallback).
    out_kernel = jax.block_until_ready(temporal_embedding(x, table, force_kernel=True))
    assert out_kernel.shape == (batch, seq, embedding_dim)
    assert jnp.allclose(out_kernel, ref, atol=1e-6, rtol=1e-6), "kernel mismatch vs gather"

    # Default dispatch (small-size fallback) must agree too.
    out_default = jax.block_until_ready(temporal_embedding(x, table))
    assert jnp.allclose(out_default, ref, atol=1e-6, rtol=1e-6), "fallback mismatch"

    # --- medium case exercising the streaming grid and a ragged last block.
    batch2, seq2 = 6, 700                      # n=4200 tokens -> ragged last tile
    table2 = jax.random.normal(k_table2, (window_size, embedding_dim), dtype=jnp.float32)
    x2 = jax.random.randint(k_idx2, (batch2, seq2), 0, window_size, dtype=jnp.int32)
    ref2 = jnp.take(table2, x2, axis=0)
    out2 = jax.block_until_ready(temporal_embedding(x2, table2, tile_n=1024))
    assert out2.shape == (batch2, seq2, embedding_dim)
    assert jnp.allclose(out2, ref2, atol=1e-6, rtol=1e-6), "streaming kernel mismatch"

    print("KERNEL_OK")
</pallas_src>

<mosaic_0001>
module attributes {stable_mosaic.version = 11 : i64} {
  func.func @_embedding_kernel(%arg0: i32, %arg1: memref<4x4xi32, #tpu.memory_space<vmem>>, %arg2: memref<64x128xf32, #tpu.memory_space<vmem>>, %arg3: memref<4x128xf32, #tpu.memory_space<vmem>>) attributes {dimension_semantics = [#tpu.dimension_semantics<parallel>], iteration_bounds = array<i64: 1>, scalar_prefetch = 0 : i64, scratch_operands = 0 : i64, tpu.core_type = #tpu.core_type<tc>, window_params = [{transform_indices = @transform_0, window_bounds = array<i64: 4, 4>}, {pipeline_mode = #tpu.pipeline_mode<synchronous>, transform_indices = @transform_1, window_bounds = array<i64: 64, 128>}, {transform_indices = @transform_2, window_bounds = array<i64: 4, 128>}]} {
    %c0 = arith.constant 0 : index
    %c0_0 = arith.constant 0 : index
    %0 = vector.load %arg1[%c0, %c0_0] : memref<4x4xi32, #tpu.memory_space<vmem>>, vector<4x4xi32>
    %1 = tpu.iota {dimensions = array<i32: 1>} : vector<4x64xi32>
    %cst = arith.constant 0.000000e+00 : f32
    %2 = vector.broadcast %cst : f32 to vector<4x64xf32>
    %3 = vector.extract_strided_slice %0 {offsets = [0, 0], sizes = [4, 1], strides = [1, 1]} : vector<4x4xi32> to vector<4x1xi32>
    %c0_i32 = arith.constant 0 : i32
    %4 = vector.broadcast %c0_i32 : i32 to vector<4x1xi32>
    %5 = arith.addi %3, %4 : vector<4x1xi32>
    %6 = vector.broadcast %5 : vector<4x1xi32> to vector<4x64xi32>
    %7 = arith.cmpi eq, %1, %6 : vector<4x64xi32>
    %8 = arith.extui %7 : vector<4x64xi1> to vector<4x64xi32>
    %9 = arith.sitofp %8 : vector<4x64xi32> to vector<4x64xf32>
    %10 = arith.addf %2, %9 : vector<4x64xf32>
    %11 = vector.extract_strided_slice %0 {offsets = [0, 1], sizes = [4, 1], strides = [1, 1]} : vector<4x4xi32> to vector<4x1xi32>
    %c16_i32 = arith.constant 16 : i32
    %12 = vector.broadcast %c16_i32 : i32 to vector<4x1xi32>
    %13 = arith.addi %11, %12 : vector<4x1xi32>
    %14 = vector.broadcast %13 : vector<4x1xi32> to vector<4x64xi32>
    %15 = arith.cmpi eq, %1, %14 : vector<4x64xi32>
    %16 = arith.extui %15 : vector<4x64xi1> to vector<4x64xi32>
    %17 = arith.sitofp %16 : vector<4x64xi32> to vector<4x64xf32>
    %18 = arith.addf %10, %17 : vector<4x64xf32>
    %19 = vector.extract_strided_slice %0 {offsets = [0, 2], sizes = [4, 1], strides = [1, 1]} : vector<4x4xi32> to vector<4x1xi32>
    %c32_i32 = arith.constant 32 : i32
    %20 = vector.broadcast %c32_i32 : i32 to vector<4x1xi32>
    %21 = arith.addi %19, %20 : vector<4x1xi32>
    %22 = vector.broadcast %21 : vector<4x1xi32> to vector<4x64xi32>
    %23 = arith.cmpi eq, %1, %22 : vector<4x64xi32>
    %24 = arith.extui %23 : vector<4x64xi1> to vector<4x64xi32>
    %25 = arith.sitofp %24 : vector<4x64xi32> to vector<4x64xf32>
    %26 = arith.addf %18, %25 : vector<4x64xf32>
    %27 = vector.extract_strided_slice %0 {offsets = [0, 3], sizes = [4, 1], strides = [1, 1]} : vector<4x4xi32> to vector<4x1xi32>
    %c48_i32 = arith.constant 48 : i32
    %28 = vector.broadcast %c48_i32 : i32 to vector<4x1xi32>
    %29 = arith.addi %27, %28 : vector<4x1xi32>
    %30 = vector.broadcast %29 : vector<4x1xi32> to vector<4x64xi32>
    %31 = arith.cmpi eq, %1, %30 : vector<4x64xi32>
    %32 = arith.extui %31 : vector<4x64xi1> to vector<4x64xi32>
    %33 = arith.sitofp %32 : vector<4x64xi32> to vector<4x64xf32>
    %34 = arith.addf %26, %33 : vector<4x64xf32>
    %c0_1 = arith.constant 0 : index
    %c0_2 = arith.constant 0 : index
    %35 = vector.load %arg2[%c0_1, %c0_2] : memref<64x128xf32, #tpu.memory_space<vmem>>, vector<64x128xf32>
    %cst_3 = arith.constant dense<0.000000e+00> : vector<4x128xf32>
    %36 = tpu.matmul %34, %35, %cst_3 {dimension_numbers = #tpu.dot_dimension_numbers<[1], [0], [0], [1], [0, 0, 1, 1], [], []>, precision = #tpu.contract_precision<fp32>} : vector<4x64xf32>, vector<64x128xf32>, vector<4x128xf32> -> vector<4x128xf32>
    %c0_4 = arith.constant 0 : index
    %c0_5 = arith.constant 0 : index
    %37 = vector.load %arg3[%c0_4, %c0_5] : memref<4x128xf32, #tpu.memory_space<vmem>>, vector<4x128xf32>
    tpu.vector_store %arg3[%c0_4, %c0_5], %36 {strides = array<i32>} : memref<4x128xf32, #tpu.memory_space<vmem>>, vector<4x128xf32>,
    return
  }
  func.func @transform_0(%arg0: i32) -> (i32, i32) {
    %c0_i32 = arith.constant 0 : i32
    %c0_i32_0 = arith.constant 0 : i32
    return %arg0, %c0_i32 : i32, i32
  }
  func.func @transform_1(%arg0: i32) -> (i32, i32) {
    %c0_i32 = arith.constant 0 : i32
    %c0_i32_0 = arith.constant 0 : i32
    %c0_i32_1 = arith.constant 0 : i32
    return %c0_i32, %c0_i32_0 : i32, i32
  }
  func.func @transform_2(%arg0: i32) -> (i32, i32) {
    %c0_i32 = arith.constant 0 : i32
    %c0_i32_0 = arith.constant 0 : i32
    return %arg0, %c0_i32 : i32, i32
  }
}

</mosaic_0001>

<bundles_post_ra>
// kernel: tpu_custom_call.1
= control target key start
LH: loop header
LB: loop body
LE: loop exit
PB: predicated region body
PF: predicated region fallthrough
CT: control target
= control target key end

     0   :  { %7 = vsyncpa [#allocation3], 0  ;;  %s1117_s0 = inlined_call_operand.hbm [shape: s32[4,4], index: 0, kind: input, shape index: {}]   ;;  %s1118_s1 = inlined_call_operand.hbm [shape: f32[64,128], index: 1, kind: input, shape index: {}]   ;;  %s1119_s2 = inlined_call_operand.hbm [shape: f32[4,128], index: 2, kind: output, shape index: {}]  }
   0x1   :  { %8 = vsyncpa [#allocation6], 0 }
   0x2   :  { %9 = vsyncpa [#allocation4], 0  ;;  %s892_s9 = smov [#allocation2]   ;;  %s893_s11 = smov [#allocation5]  }
   0x3   :  { %s16_s10 = sshll.u32 %s892_s9, 4  ;;  %s25_s12 = sshll.u32 %s893_s11, 4  ;;  %s17_s10 = int_to_ptr.vmem [resolvable:$true] %s16_s10  ;;  %s26_s12 = int_to_ptr.vmem [resolvable:$true] %s25_s12 }
   0x4   :  { %s834_s13 = scalar_lea.vmem %s17_s10, 64  ;;  %p839_p1 = scmp.lt.s32.totalorder %s17_s10, %s17_s10 }
   0x5   :  { %p835_p0 = scmp.ne.s32.totalorder %s17_s10, %s834_s13  ;;  %p840_p2 = scmp.lt.s32.totalorder %s834_s13, %s834_s13 }
   0x7   :  { %p841_p3 = por %p840_p2, %p839_p1 }
   0x9   :  { %p842_p4 = pnand %p841_p3, %p835_p0 }
   0xb   :  { %845 = shalt.err (!%p842_p4)
}
   0xc   :  { %19 = dma.hbm_to_vmem [thread:$0]  %s1117_s0, 64, %s17_s10, [#allocation3]  }
   0xd   :  { %s854_s16 = scalar_lea.vmem %s26_s12, 1024  ;;  %p859_p6 = scmp.lt.s32.totalorder %s26_s12, %s26_s12 }
   0xe   :  { %p855_p5 = scmp.ne.s32.totalorder %s26_s12, %s854_s16  ;;  %p860_p7 = scmp.lt.s32.totalorder %s854_s16, %s854_s16 }
  0x10   :  { %p861_p8 = por %p860_p7, %p859_p6 }
  0x12   :  { %p862_p9 = pnand %p861_p8, %p855_p5 }
  0x14   :  { %865 = shalt.err (!%p862_p9)
}
  0x15   :  { %s894_s17 = smov 128   ;;  %s895_s18 = smov 8  }
  0x16   :  { %31 = dma.hbm_to_vmem [thread:$0]  %s1118_s1, 1024, %s26_s12, [#allocation6], %s894_s17, %s894_s17, %s895_s18  }
  0x17   :  { %886 = dma.done.wait [#allocation3], 64  }
  0x18   :  { %887 = vsyncadd [#allocation3], 4294967232 }
  0x19   :  { %888 = dma.done.wait [#allocation6], 1024  }
  0x1a   :  { %889 = vsyncadd [#allocation6], 4294966272  ;;  %v896_v0 = vmov 0   ;;  %v897_v1 = vmov 2   ;;  %v898_v2 = vmov 0.0   ;;  %v79_v4 = vld [vmem:[#allocation5 + $0x38] sm:$0xff]  ;;  %v39_v57 = vlaneseq }
  0x1b   :  { %821 = vset.pattern.permute.xlu0 %v896_v0  ;;  %823 = vset.pattern.permute.xlu1 %v897_v1  ;;  %v38_v3 = vld [vmem:[#allocation2] sm:$0xf]  ;;  %v78_v5 = vld [vmem:[#allocation5 + $0x30] sm:$0xff]  ;;  %v926_v8 = vand.u32 4294901760, %v79_v4  ;;  %v77_v9 = vld [vmem:[#allocation5 + $0x28] sm:$0xff]  ;;  %v899_v26 = vmov 1  }
  0x1c   :  { %715 = vmatprep.subr.mxu1 %v898_v2  ;;  %696 = vmatprep.subr.mxu0 %v898_v2  ;;  %v56_v6 = vadd.s32 32, %v38_v3  ;;  %v48_v7 = vadd.s32 16, %v38_v3  ;;  %v76_v10 = vld [vmem:[#allocation5 + $0x20] sm:$0xff]  ;;  %v928_v11 = vand.u32 4294901760, %v78_v5  ;;  %v930_v12 = vand.u32 4294901760, %v77_v9  ;;  %v75_v14 = vld [vmem:[#allocation5 + $0x18] sm:$0xff] }
  0x1d   :  { %42 = vperm.xlu0 %821, %v38_v3   ;;  %v932_v13 = vand.u32 4294901760, %v76_v10  ;;  %v74_v15 = vld [vmem:[#allocation5 + $0x10] sm:$0xff]  ;;  %v73_v16 = vld [vmem:[#allocation5 + $0x8] sm:$0xff]  ;;  %v935_v17 = vsub.f32 %v79_v4, %v926_v8  ;;  %697 = vmatpush3.msra.mxu0 %v926_v8  ;;  %v938_v18 = vand.u32 4294901760, %v75_v14  ;;  %v72_v21 = vld [vmem:[#allocation5] sm:$0xff]  ;;  %v64_v22 = vadd.s32 48, %v38_v3 }
  0x1e   :  { %58 = vperm.xlu1 %823, %v56_v6   ;;  %v940_v19 = vand.u32 4294901760, %v74_v15  ;;  %v942_v20 = vand.u32 4294901760, %v73_v16  ;;  %v945_v23 = vsub.f32 %v78_v5, %v928_v11  ;;  %v948_v24 = vsub.f32 %v77_v9, %v930_v12  ;;  %698 = vmatprep.subr.mxu0 %v898_v2  ;;  %s902_s0 = smov [#allocation7]  }
  0x1f   :  { %v951_v25 = vsub.f32 %v76_v10, %v932_v13  ;;  %v186_v27 = vand.u32 4294901760, %v935_v17  ;;  %v956_v28 = vsub.f32 %v75_v14, %v938_v18  ;;  %699 = vmatpush3.msra.mxu0 %v928_v11  ;;  %v966_v33 = vand.u32 4294901760, %v72_v21  ;;  %s628_s1 = sshll.u32 %s902_s0, 4  ;;  %s629_s1 = int_to_ptr.vmem [resolvable:$true] %s628_s1 }
  0x20   :  { %v960_v29 = vsub.f32 %v74_v15, %v940_v19  ;;  %v193_v30 = vand.u32 4294901760, %v945_v23  ;;  %v200_v31 = vand.u32 4294901760, %v948_v24  ;;  %700 = vmatprep.subr.mxu0 %v898_v2  ;;  %v900_v34 = vmov 3   ;;  %s866_s21 = scalar_lea.vmem %s629_s1, 64  ;;  %p871_p11 = scmp.lt.s32.totalorder %s629_s1, %s629_s1 }
  0x21   :  { %822 = vset.pattern.permute.xlu0 %v899_v26  ;;  %v207_v32 = vand.u32 4294901760, %v951_v25  ;;  %v187_v35 = vsub.f32 %v935_v17, %v186_v27  ;;  %v214_v36 = vand.u32 4294901760, %v956_v28  ;;  %701 = vmatpush3.msra.mxu0 %v930_v12  ;;  %v974_v37 = vsub.f32 %v73_v16, %v942_v20  ;;  %p867_p10 = scmp.ne.s32.totalorder %s629_s1, %s866_s21  ;;  %p872_p12 = scmp.lt.s32.totalorder %s866_s21, %s866_s21 }
  0x22   :  { %50 = vperm.xlu0 %822, %v48_v7   ;;  %824 = vset.pattern.permute.xlu1 %v900_v34  ;;  %v194_v38 = vsub.f32 %v945_v23, %v193_v30  ;;  %v201_v39 = vsub.f32 %v948_v24, %v200_v31  ;;  %v221_v42 = vand.u32 4294901760, %v960_v29  ;;  %v989_v44 = vsub.f32 %v72_v21, %v966_v33 }
  0x23   :  { %66 = vperm.xlu1 %824, %v64_v22   ;;  %702 = vmatprep.subr.mxu0 %v898_v2  ;;  %v188_v40 = vand.u32 4294901760, %v187_v35  ;;  %v208_v41 = vsub.f32 %v951_v25, %v207_v32  ;;  %v215_v46 = vsub.f32 %v956_v28, %v214_v36  ;;  %v228_v47 = vand.u32 4294901760, %v974_v37  ;;  %p873_p13 = por %p872_p12, %p871_p11 }
  0x24   :  { %703 = vmatpush3.msra.mxu0 %v932_v13  ;;  %v195_v43 = vand.u32 4294901760, %v194_v38  ;;  %v202_v45 = vand.u32 4294901760, %v201_v39  ;;  %vm901_vm0 = vmmov 0   ;;  %v222_v49 = vsub.f32 %v960_v29, %v221_v42 }
  0x25   :  { %704 = vmatprep.subr.mxu0 %v898_v2  ;;  %716 = vmatpush3.msra.mxu1 %v188_v40  ;;  %v209_v48 = vand.u32 4294901760, %v208_v41  ;;  %v235_v50 = vand.u32 4294901760, %v989_v44  ;;  %v216_v51 = vand.u32 4294901760, %v215_v46  ;;  %v229_v52 = vsub.f32 %v974_v37, %v228_v47  ;;  %p874_p0 = pnand %p873_p13, %p867_p10 }
  0x26   :  { %825 = vset.pattern.permute.xlu0 %v900_v34  ;;  %705 = vmatpush3.msra.mxu0 %v938_v18  ;;  %v223_v53 = vand.u32 4294901760, %v222_v49  ;;  %v40_v58 = vand.u32 127, %v39_v57  ;;  %vm80_vm5 = vcmask 523264  }
  0x27   :  { %717 = vmatprep.subr.mxu1 %v898_v2  ;;  %731 = vmatprep.mubr.msk.f32.mxu1 %vm901_vm0, %v898_v2  ;;  %v236_v54 = vsub.f32 %v989_v44, %v235_v50  ;;  %v230_v55 = vand.u32 4294901760, %v229_v52 }
  0x28   :  { %718 = vmatpush3.msra.mxu1 %v195_v43  ;;  %706 = vmatprep.subr.mxu0 %v898_v2 }
  0x29   :  { %719 = vmatprep.subr.mxu1 %v898_v2  ;;  %707 = vmatpush3.msra.mxu0 %v940_v19  ;;  %v237_v56 = vand.u32 4294901760, %v236_v54 }
  0x2a   :  { %720 = vmatpush3.msra.mxu1 %v202_v45  ;;  %708 = vmatprep.subr.mxu0 %v898_v2 }
  0x2b   :  { %721 = vmatprep.subr.mxu1 %v898_v2  ;;  %709 = vmatpush3.msra.mxu0 %v942_v20 }
  0x2c   :  { %722 = vmatpush3.msra.mxu1 %v209_v48  ;;  %710 = vmatprep.subr.mxu0 %v898_v2 }
  0x2d   :  { %723 = vmatprep.subr.mxu1 %v898_v2  ;;  %711 = vmatpush3.msra.mxu0 %v966_v33 }
  0x2e   :  { %724 = vmatpush3.msra.mxu1 %v216_v51  ;;  %712 = vmatprep.mubr.msk.f32.mxu0 %vm901_vm0, %v898_v2 }
  0x2f   :  { %725 = vmatprep.subr.mxu1 %v898_v2  ;;  %734 = vmatprep.subr.mxu0 %v898_v2 }
  0x30   :  { %726 = vmatpush3.msra.mxu1 %v223_v53 }
  0x31   :  { %727 = vmatprep.subr.mxu1 %v898_v2 }
  0x32   :  { %728 = vmatpush3.msra.mxu1 %v230_v55 }
  0x33   :  { %729 = vmatprep.subr.mxu1 %v898_v2 }
  0x34   :  { %730 = vmatpush3.msra.mxu1 %v237_v56 }
  0x35   :  { %753 = vmatprep.subr.mxu1 %v898_v2 }
  0x98   :  { %v43_v59 = vpop.permute.xlu0 %42 }
  0x99   :  { %v59_v60 = vpop.permute.xlu1 %58  ;;  %vm44_vm1 = vcmp.eq.s32.totalorder %v40_v58, %v43_v59 }
  0x9a   :  { %vm60_vm2 = vcmp.eq.s32.totalorder %v40_v58, %v59_v60  ;;  %v638_v62 = vsel %vm44_vm1, 1.0, %v898_v2 }
  0x9b   :  { %v640_v3 = vsel %vm60_vm2, 1.0, %v898_v2 }
  0x9d   :  { %v51_v61 = vpop.permute.xlu0 %50 }
  0x9e   :  { %vm52_vm3 = vcmp.eq.s32.totalorder %v40_v58, %v51_v61  ;;  %v67_v0 = vpop.permute.xlu1 %66 }
  0x9f   :  { %v639_v63 = vsel %vm52_vm3, 1.0, %v898_v2  ;;  %vm68_vm4 = vcmp.eq.s32.totalorder %v40_v58, %v67_v0 }
  0xa0   :  { %v55_v1 = vadd.f32 %v639_v63, %v638_v62  ;;  %v641_v4 = vsel %vm68_vm4, 1.0, %v898_v2 }
  0xa2   :  { %v63_v5 = vadd.f32 %v640_v3, %v55_v1 }
  0xa4   :  { %v71_v6 = vadd.f32 %v641_v4, %v63_v5 }
  0xa6   :  { %v82_v7 = vsel %vm80_vm5, %v71_v6, 0 }
  0xa7   :  { %v1030_v9 = vand.u32 4294901760, %v82_v7 }
  0xa9   :  { %v158_v10 = vsub.f32 %v82_v7, %v1030_v9  ;;  %732 = vmatmul.mubr.f32.vlgmr.msra.gmra.mxu1 %v1030_v9 }
  0xaa   :  { %754 = vmatpush3.msra.mxu1 %v926_v8  ;;  %769 = vmatprep.mubr.msk.f32.mxu1 %vm901_vm0, %v898_v2 }
  0xab   :  { %755 = vmatprep.subr.mxu1 %v898_v2  ;;  %v159_v14 = vand.u32 4294901760, %v158_v10 }
  0xac   :  { %756 = vmatpush3.msra.mxu1 %v928_v11 }
  0xad   :  { %757 = vmatprep.subr.mxu1 %v898_v2  ;;  %v160_v15 = vsub.f32 %v158_v10, %v159_v14 }
  0xae   :  { %758 = vmatpush3.msra.mxu1 %v930_v12 }
  0xaf   :  { %759 = vmatprep.subr.mxu1 %v898_v2  ;;  %v161_v16 = vand.u32 4294901760, %v160_v15 }
  0xb0   :  { %760 = vmatpush3.msra.mxu1 %v932_v13 }
  0xb1   :  { %761 = vmatprep.subr.mxu1 %v898_v2  ;;  %713 = vmatmul.mubr.f32.vlgmr.msra.gmra.mxu0 %v161_v16 }
  0xb2   :  { %735 = vmatpush3.msra.mxu0 %v935_v17  ;;  %762 = vmatpush3.msra.mxu1 %v938_v18 }
  0xb3   :  { %736 = vmatprep.subr.mxu0 %v898_v2  ;;  %763 = vmatprep.subr.mxu1 %v898_v2 }
  0xb4   :  { %737 = vmatpush3.msra.mxu0 %v945_v23  ;;  %764 = vmatpush3.msra.mxu1 %v940_v19 }
  0xb5   :  { %738 = vmatprep.subr.mxu0 %v898_v2  ;;  %765 = vmatprep.subr.mxu1 %v898_v2 }
  0xb6   :  { %739 = vmatpush3.msra.mxu0 %v948_v24  ;;  %766 = vmatpush3.msra.mxu1 %v942_v20 }
  0xb7   :  { %740 = vmatprep.subr.mxu0 %v898_v2  ;;  %767 = vmatprep.subr.mxu1 %v898_v2 }
  0xb8   :  { %741 = vmatpush3.msra.mxu0 %v951_v25  ;;  %768 = vmatpush3.msra.mxu1 %v966_v33 }
  0xb9   :  { %742 = vmatprep.subr.mxu0 %v898_v2  ;;  %770 = vmatmul.mubr.f32.vlgmr.msra.gmra.mxu1 %v159_v14 }
  0xba   :  { %791 = vmatprep.subr.mxu1 %v898_v2  ;;  %743 = vmatpush3.msra.mxu0 %v956_v28 }
  0xbb   :  { %792 = vmatpush3.msra.mxu1 %v926_v8  ;;  %744 = vmatprep.subr.mxu0 %v898_v2 }
  0xbc   :  { %793 = vmatprep.subr.mxu1 %v898_v2  ;;  %745 = vmatpush3.msra.mxu0 %v960_v29 }
  0xbd   :  { %794 = vmatpush3.msra.mxu1 %v928_v11  ;;  %746 = vmatprep.subr.mxu0 %v898_v2 }
  0xbe   :  { %795 = vmatprep.subr.mxu1 %v898_v2  ;;  %747 = vmatpush3.msra.mxu0 %v974_v37 }
  0xbf   :  { %796 = vmatpush3.msra.mxu1 %v930_v12  ;;  %748 = vmatprep.subr.mxu0 %v898_v2 }
  0xc0   :  { %797 = vmatprep.subr.mxu1 %v898_v2  ;;  %749 = vmatpush3.msra.mxu0 %v989_v44 }
  0xc1   :  { %750 = vmatprep.mubr.msk.f32.mxu0 %vm901_vm0, %v898_v2  ;;  %798 = vmatpush3.msra.mxu1 %v932_v13 }
  0xc2   :  { %751 = vmatmul.mubr.f32.vlgmr.msra.gmra.mxu0 %v158_v10  ;;  %772 = vmatprep.subr.mxu0 %v898_v2 }
  0xc3   :  { %799 = vmatprep.subr.mxu1 %v898_v2  ;;  %773 = vmatpush3.msra.mxu0 %v186_v27 }
  0xc4   :  { %800 = vmatpush3.msra.mxu1 %v938_v18  ;;  %774 = vmatprep.subr.mxu0 %v898_v2 }
  0xc5   :  { %801 = vmatprep.subr.mxu1 %v898_v2  ;;  %775 = vmatpush3.msra.mxu0 %v193_v30 }
  0xc6   :  { %802 = vmatpush3.msra.mxu1 %v940_v19  ;;  %776 = vmatprep.subr.mxu0 %v898_v2 }
  0xc7   :  { %803 = vmatprep.subr.mxu1 %v898_v2  ;;  %777 = vmatpush3.msra.mxu0 %v200_v31 }
  0xc8   :  { %804 = vmatpush3.msra.mxu1 %v942_v20  ;;  %778 = vmatprep.subr.mxu0 %v898_v2 }
  0xc9   :  { %805 = vmatprep.subr.mxu1 %v898_v2  ;;  %779 = vmatpush3.msra.mxu0 %v207_v32 }
  0xca   :  { %806 = vmatpush3.msra.mxu1 %v966_v33  ;;  %807 = vmatprep.mubr.msk.f32.mxu1 %vm901_vm0, %v898_v2 }
  0xcb   :  { %780 = vmatprep.subr.mxu0 %v898_v2  ;;  %808 = vmatmul.mubr.f32.vlgmr.msra.gmra.mxu1 %v1030_v9 }
  0xcc   :  { %781 = vmatpush3.msra.mxu0 %v214_v36  ;;  %788 = vmatprep.mubr.msk.f32.mxu0 %vm901_vm0, %v898_v2 }
  0xcd   :  { %782 = vmatprep.subr.mxu0 %v898_v2 }
  0xce   :  { %783 = vmatpush3.msra.mxu0 %v221_v42 }
  0xcf   :  { %784 = vmatprep.subr.mxu0 %v898_v2 }
  0xd0   :  { %785 = vmatpush3.msra.mxu0 %v228_v47 }
  0xd1   :  { %786 = vmatprep.subr.mxu0 %v898_v2 }
  0xd2   :  { %787 = vmatpush3.msra.mxu0 %v235_v50 }
  0xd3   :  { %789 = vmatmul.mubr.f32.vlgmr.msra.gmra.mxu0 %v1030_v9 }
 0x169   :  { %v274_v8 = vpop.f32.mrf.mxu1 }
 0x16b   :  { %v733_v11 = vpop.f32.mrf.mxu1 }
 0x171   :  { %v163_v12 = vpop.f32.mrf.mxu0 }
 0x172   :  { %v275_v22 = vadd.f32 %v274_v8, %v163_v12 }
 0x173   :  { %v714_v13 = vpop.f32.mrf.mxu0 }
 0x179   :  { %v443_v17 = vpop.f32.mrf.mxu1 }
 0x17b   :  { %v771_v18 = vpop.f32.mrf.mxu1 }
 0x182   :  { %v362_v19 = vpop.f32.mrf.mxu0 }
 0x183   :  { %v363_v24 = vadd.f32 %v362_v19, %v275_v22 }
 0x184   :  { %v752_v20 = vpop.f32.mrf.mxu0 }
 0x185   :  { %v444_v25 = vadd.f32 %v443_v17, %v363_v24 }
 0x18b   :  { %v617_v21 = vpop.f32.mrf.mxu1 }
 0x18d   :  { %v809_v23 = vpop.f32.mrf.mxu1 }
 0x193   :  { %v538_v26 = vpop.f32.mrf.mxu0 }
 0x194   :  { %v539_v2 = vadd.f32 %v538_v26, %v444_v25 }
 0x195   :  { %v790_v27 = vpop.f32.mrf.mxu0 }
 0x196   :  { %v618_v28 = vadd.f32 %v617_v21, %v539_v2 }
 0x198   :  { %621 = vst [vmem:[#allocation7] sm:$0xf] %v618_v28 }
 0x199   :  { %877 = shalt.err (!%p874_p0)
}
 0x19a   :  { %631 = dma.vmem_to_hbm [thread:$0]  %s629_s1, 64, %s1119_s2, [#allocation4]  }
 0x19b   :  { %890 = dma.done.wait [#allocation4], 64  }
 0x19c   :  { %891 = vsyncadd [#allocation4], 4294967232 }
 0x19d   :  { %635 = vsyncpa [#allocation3], 1 }
 0x19e   :  { %636 = vsyncpa [#allocation6], 1 }
 0x19f   :  { %637 = vsyncpa [#allocation4], 1 }

</bundles_post_ra>
